<compile_context>
chip_gen: v7x
topology: tpu7x:2x2x1
jax: 0.10.0
libtpu: 0.0.40
codegen_flags: <defaults>
</compile_context>

<pallas_src>
import functools

import jax
import jax.numpy as jnp
from jax.experimental import pallas as pl
from jax.experimental.pallas import tpu as pltpu


def _lora_convt_kernel(w_ref, x_ref, b_ref, o_ref, *, compute_dtype):
    # w_ref: (OD, Cin)  fused (base + scale*LoRA) weight, compute_dtype
    # x_ref: (Cin, TJ)  activation tile in its HBM dtype
    # b_ref: (OD, 1)    float32 bias column
    # o_ref: (OD, TJ)   output tile (original dtype)
    x = x_ref[...].astype(compute_dtype)            # cheap VPU cast, hidden
    acc = jnp.dot(w_ref[...], x, preferred_element_type=jnp.float32)
    o_ref[...] = (acc + b_ref[...]).astype(o_ref.dtype)


def _pick_spatial_tile(hw):
    """Largest multiple-of-128 divisor of hw that is <= 2048 (lane-dense tile)."""
    if hw % 128 != 0:
        # TODO(synk): pad ragged spatial extents instead of a full-row block.
        return hw
    for cand in range(min(2048, hw), 127, -128):
        if hw % cand == 0:
            return cand
    return 128


def lora_conv_transpose2d(x, w0, b0, w_down, w_up, *, stride, lora_scale=1.0,
                          compute_dtype=jnp.bfloat16):
    """Forward of MonkeyPatchLoRAConvTranspose2D.

    x      : (N, Cin, H, W)      NCHW input
    w0     : (Cin, Cout, kH, kW) base ConvTranspose2d weight
    b0     : (Cout,) or None     base ConvTranspose2d bias
    w_down : (Cin, rank, kH, kW) LoRA down ConvTranspose2d weight
    w_up   : (rank, Cout, 1, 1)  LoRA up 1x1 ConvTranspose2d weight
    """
    N, Cin, H, W = x.shape
    Cout, kH, kW = w0.shape[1], w0.shape[2], w0.shape[3]
    assert stride == kH == kW, "kernel path assumes stride == kernel_size (no overlap)"
    KK = kH * kW
    OD = Cout * KK
    HW = H * W
    orig_dtype = x.dtype

    # ---- glue (all tiny, weight-sized): fold LoRA up into down, fuse with base.
    wl = jnp.einsum(
        "crhw,ro->cohw",
        w_down.astype(jnp.float32),
        w_up[:, :, 0, 0].astype(jnp.float32),
    )                                                             # (Cin, Cout, kH, kW)
    w_fused = w0.astype(jnp.float32) + jnp.float32(lora_scale) * wl
    w_t = w_fused.transpose(1, 2, 3, 0).reshape(OD, Cin).astype(compute_dtype)
    if b0 is None:
        b0 = jnp.zeros((Cout,), jnp.float32)
    b_col = jnp.repeat(b0.astype(jnp.float32), KK).reshape(OD, 1)

    # Activation: only a trailing-dim merge (free view) — no HBM transpose.
    x3 = x.reshape(N, Cin, HW)

    TJ = _pick_spatial_tile(HW)
    grid = (N, HW // TJ)

    # VMEM budget: double-buffered x/out tiles + resident weight/bias.
    in_bytes = jnp.dtype(orig_dtype).itemsize
    w_bytes = jnp.dtype(compute_dtype).itemsize
    est = (2 * (Cin * TJ * in_bytes + OD * TJ * in_bytes)
           + 2 * (OD * Cin * w_bytes + OD * 4))
    vmem_limit = int(min(48 * 2**20, max(32 * 2**20, 2 * est)))

    kernel = functools.partial(_lora_convt_kernel, compute_dtype=compute_dtype)
    y_t = pl.pallas_call(
        kernel,
        out_shape=jax.ShapeDtypeStruct((N, OD, HW), orig_dtype),
        grid_spec=pltpu.PrefetchScalarGridSpec(
            num_scalar_prefetch=0,
            grid=grid,
            in_specs=[
                pl.BlockSpec((OD, Cin), lambda n, j: (0, 0)),        # fused weight
                pl.BlockSpec((None, Cin, TJ), lambda n, j: (n, 0, j)),
                pl.BlockSpec((OD, 1), lambda n, j: (0, 0)),          # bias column
            ],
            out_specs=pl.BlockSpec((None, OD, TJ), lambda n, j: (n, 0, j)),
        ),
        compiler_params=pltpu.CompilerParams(
            dimension_semantics=("parallel", "parallel"),
            vmem_limit_bytes=vmem_limit,
        ),
    )(w_t, x3, b_col)

    # ---- glue: pixel-shuffle scatter (Cout, kH, kW, H, W) -> NCHW.
    # TODO(synk): fold this scatter into the kernel's output store/BlockSpec.
    y = (
        y_t.reshape(N, Cout, kH, kW, H, W)
        .transpose(0, 1, 4, 2, 5, 3)
        .reshape(N, Cout, H * kH, W * kW)
    )
    return y.astype(orig_dtype)


# ---------------- pure-JAX reference (independent of the kernel math) -----------
def _conv_transpose2d_ref(x, w, bias, stride, padding, output_padding):
    Cin, Cout, kH, kW = w.shape
    w_f = jnp.flip(w, axis=(2, 3)).transpose(1, 0, 2, 3)  # (Cout, Cin, kH, kW)
    pad_h = (kH - 1 - padding, kH - 1 - padding + output_padding)
    pad_w = (kW - 1 - padding, kW - 1 - padding + output_padding)
    out = jax.lax.conv_general_dilated(
        x,
        w_f,
        window_strides=(1, 1),
        padding=(pad_h, pad_w),
        lhs_dilation=(stride, stride),
        dimension_numbers=("NCHW", "OIHW", "NCHW"),
        precision=jax.lax.Precision.HIGHEST,
    )
    if bias is not None:
        out = out + bias[None, :, None, None]
    return out


def _reference_forward(x, w0, b0, w_down, w_up, stride, lora_scale):
    base = _conv_transpose2d_ref(x, w0, b0, stride, 0, 0)
    down = _conv_transpose2d_ref(x, w_down, None, stride, 0, 0)
    up = _conv_transpose2d_ref(down, w_up, None, 1, 0, 0)
    return base + lora_scale * up


if __name__ == "__main__":
    # Small SAM-like config: ConvTranspose2d(Cin=32, Cout=32, kernel=2, stride=2)
    N, Cin, H, W = 2, 32, 16, 16
    Cout, K, stride = 32, 2, 2
    rank = 4
    lora_scale = 1.0

    key = jax.random.PRNGKey(0)
    k_x, k_w0, k_b0, k_dn, k_up = jax.random.split(key, 5)

    x = jax.random.normal(k_x, (N, Cin, H, W), jnp.float32)
    w0 = jax.random.normal(k_w0, (Cin, Cout, K, K), jnp.float32) * (1.0 / (Cin * K * K)) ** 0.5
    b0 = jax.random.normal(k_b0, (Cout,), jnp.float32) * 0.1
    w_down = jax.random.normal(k_dn, (Cin, rank, K, K), jnp.float32) * (1.0 / rank)
    # The module inits the up weight to zeros (fresh LoRA); use small nonzero
    # values here so the LoRA branch of the kernel is actually exercised.
    w_up = jax.random.normal(k_up, (rank, Cout, 1, 1), jnp.float32) * 0.1

    y_ref = _reference_forward(x, w0, b0, w_down, w_up, stride, lora_scale)

    # Fast path: bf16 MXU operands, f32 accumulation.
    y_bf16 = lora_conv_transpose2d(
        x, w0, b0, w_down, w_up, stride=stride, lora_scale=lora_scale,
        compute_dtype=jnp.bfloat16,
    )
    y_bf16 = jax.block_until_ready(y_bf16)
    assert y_bf16.shape == (N, Cout, H * stride, W * stride), y_bf16.shape
    assert jnp.allclose(y_bf16, y_ref, atol=3e-2, rtol=3e-2), float(
        jnp.max(jnp.abs(y_bf16 - y_ref))
    )

    # f32 path, tight check of the kernel math itself.
    y_f32 = lora_conv_transpose2d(
        x, w0, b0, w_down, w_up, stride=stride, lora_scale=lora_scale,
        compute_dtype=jnp.float32,
    )
    y_f32 = jax.block_until_ready(y_f32)
    assert jnp.allclose(y_f32, y_ref, atol=1e-3, rtol=1e-3), float(
        jnp.max(jnp.abs(y_f32 - y_ref))
    )

    print("KERNEL_OK")
</pallas_src>

<mosaic_0001>
module attributes {stable_mosaic.version = 11 : i64} {
  func.func @_lora_convt_kernel(%arg0: i32, %arg1: i32, %arg2: memref<128x32xbf16, #tpu.memory_space<vmem>>, %arg3: memref<1x32x256xf32, #tpu.memory_space<vmem>>, %arg4: memref<128x1xf32, #tpu.memory_space<vmem>>, %arg5: memref<1x128x256xf32, #tpu.memory_space<vmem>>) attributes {dimension_semantics = [#tpu.dimension_semantics<parallel>, #tpu.dimension_semantics<parallel>], iteration_bounds = array<i64: 2, 1>, scalar_prefetch = 0 : i64, scratch_operands = 0 : i64, tpu.core_type = #tpu.core_type<tc>, window_params = [{pipeline_mode = #tpu.pipeline_mode<synchronous>, transform_indices = @transform_0, window_bounds = array<i64: 128, 32>}, {transform_indices = @transform_1, window_bounds = array<i64: 1, 32, 256>}, {pipeline_mode = #tpu.pipeline_mode<synchronous>, transform_indices = @transform_2, window_bounds = array<i64: 128, 1>}, {transform_indices = @transform_3, window_bounds = array<i64: 1, 128, 256>}]} {
    %c0 = arith.constant 0 : index
    %c0_0 = arith.constant 0 : index
    %c0_1 = arith.constant 0 : index
    %0 = vector.load %arg3[%c0, %c0_0, %c0_1] : memref<1x32x256xf32, #tpu.memory_space<vmem>>, vector<1x32x256xf32>
    %1 = vector.shape_cast %0 : vector<1x32x256xf32> to vector<32x256xf32>
    %2 = arith.truncf %1 : vector<32x256xf32> to vector<32x256xbf16>
    %c0_2 = arith.constant 0 : index
    %c0_3 = arith.constant 0 : index
    %3 = vector.load %arg2[%c0_2, %c0_3] : memref<128x32xbf16, #tpu.memory_space<vmem>>, vector<128x32xbf16>
    %cst = arith.constant dense<0.000000e+00> : vector<128x256xf32>
    %4 = tpu.matmul %3, %2, %cst {dimension_numbers = #tpu.dot_dimension_numbers<[1], [0], [0], [1], [0, 0, 1, 1], [], []>} : vector<128x32xbf16>, vector<32x256xbf16>, vector<128x256xf32> -> vector<128x256xf32>
    %c0_4 = arith.constant 0 : index
    %c0_5 = arith.constant 0 : index
    %5 = vector.load %arg4[%c0_4, %c0_5] : memref<128x1xf32, #tpu.memory_space<vmem>>, vector<128x1xf32>
    %6 = vector.broadcast %5 : vector<128x1xf32> to vector<128x256xf32>
    %7 = arith.addf %4, %6 : vector<128x256xf32>
    %c0_6 = arith.constant 0 : index
    %c0_7 = arith.constant 0 : index
    %c0_8 = arith.constant 0 : index
    %8 = vector.load %arg5[%c0_6, %c0_7, %c0_8] : memref<1x128x256xf32, #tpu.memory_space<vmem>>, vector<1x128x256xf32>
    %9 = vector.shape_cast %8 : vector<1x128x256xf32> to vector<128x256xf32>
    %10 = vector.shape_cast %7 : vector<128x256xf32> to vector<1x128x256xf32>
    tpu.vector_store %arg5[%c0_6, %c0_7, %c0_8], %10 {strides = array<i32>} : memref<1x128x256xf32, #tpu.memory_space<vmem>>, vector<1x128x256xf32>,
    return
  }
  func.func @transform_0(%arg0: i32, %arg1: i32) -> (i32, i32) {
    %c0_i32 = arith.constant 0 : i32
    %c0_i32_0 = arith.constant 0 : i32
    %c0_i32_1 = arith.constant 0 : i32
    return %c0_i32, %c0_i32_0 : i32, i32
  }
  func.func @transform_1(%arg0: i32, %arg1: i32) -> (i32, i32, i32) {
    %c0_i32 = arith.constant 0 : i32
    %c0_i32_0 = arith.constant 0 : i32
    return %arg0, %c0_i32, %arg1 : i32, i32, i32
  }
  func.func @transform_2(%arg0: i32, %arg1: i32) -> (i32, i32) {
    %c0_i32 = arith.constant 0 : i32
    %c0_i32_0 = arith.constant 0 : i32
    %c0_i32_1 = arith.constant 0 : i32
    return %c0_i32, %c0_i32_0 : i32, i32
  }
  func.func @transform_3(%arg0: i32, %arg1: i32) -> (i32, i32, i32) {
    %c0_i32 = arith.constant 0 : i32
    %c0_i32_0 = arith.constant 0 : i32
    return %arg0, %c0_i32, %arg1 : i32, i32, i32
  }
}

</mosaic_0001>

<bundles_post_ra>
// kernel: tpu_custom_call.1
= control target key start
LH: loop header
LB: loop body
LE: loop exit
PB: predicated region body
PF: predicated region fallthrough
CT: control target
= control target key end

     0   :  { %8 = vsyncpa [#allocation3], 0  ;;  %s1097_s0 = inlined_call_operand.vmem [shape: bf16[128,32], index: 0, kind: input, shape index: {}]   ;;  %s1098_s1 = inlined_call_operand.vmem [shape: f32[2,32,256], index: 1, kind: input, shape index: {}]   ;;  %s1099_s2 = inlined_call_operand.vmem [shape: f32[128,1], index: 2, kind: input, shape index: {}]   ;;  %s1100_s3 = inlined_call_operand.hbm [shape: f32[2,128,256], index: 3, kind: output, shape index: {}]  }
   0x1   :  { %10 = vsyncpa [#allocation3 + $0x1], 0  ;;  %s837_s12 = smov 0   ;;  %s839_s13 = smov 0  }
   0x2   :  { %s841_s14 = smov 0   ;;  %s843_s15 = smov 0  }
   0x3   :  { %s845_s16 = smov 0   ;;  %s847_s17 = smov 0  }
   0x4 LB: > { %s630_s18 = sadd.s32 4294967295, %s811_s17   ;;  %s631_s19 = sadd.s32 4294967294, %s811_s17   ;;  %s811_s17 = sphi %s847_s17, %s16_s17   ;;  %s807_s16 = sphi %s845_s16, %s1107_s16   ;;  %s803_s15 = sphi %s843_s15, %s1106_s15   ;;  %s799_s14 = sphi %s841_s14, %s1105_s14   ;;  %s795_s13 = sphi %s839_s13, %s1104_s13   ;;  %s791_s12 = sphi %s837_s12, %s1103_s12  }
   0x5   : > { %s28_s20 = sadd.s32 1, %s807_s16  ;;  %s107_s21 = sadd.s32 1, %s799_s14 }
   0x6   : > { %p30_p0 = scmp.ge.s32.totalorder %s28_s20, 2  ;;  %p117_p1 = scmp.ne.s32.totalorder %s799_s14, %s795_s13 }
   0x7   : > { %p118_p2 = scmp.eq.s32.totalorder %s630_s18, 1  ;;  %p123_p3 = scmp.ne.s32.totalorder %s795_s13, %s791_s12 }
   0x8   : > { %s1109_s20 = smov (%p30_p0, %s28_s20), 0  ;;  %p124_p5 = scmp.eq.s32.totalorder %s631_s19, 1 }
   0x9   : > { %p877_p4 = por %p118_p2, %p117_p1  ;;  %s102_s23 = ssub.s32 %s807_s16, %s1109_s20 }
   0xa   : > { %p634_p6 = scmp.ge.s32.totalorder %s811_s17, 1  ;;  %p105_p7 = scmp.eq.s32.totalorder %s102_s23, 0 }
   0xb   : > { %p884_p8 = por %p124_p5, %p123_p3  ;;  %p161_p9 = scmp.lt.s32.totalorder %s811_s17, 3 }
   0xc   : > { %s890_s25 = scalar_select %p105_p7, %s799_s14, %s107_s21  }
   0xd   : > { %p162_p10 = pnand %p634_p6, %p161_p9 }
   0xe   : > { %p190_p11 = scmp.lt.s32.totalorder (!%p162_p10), %s803_s15, 1  ;;  %v813_v0 = vmov (!%p162_p10), 0   ;;  %v231_v13 = vld [vmem:[%s1099_s2 + $0x10] sm:$0xff] (!%p162_p10)  ;;  %v229_v14 = vld [vmem:[%s1099_s2] sm:$0xff] (!%p162_p10)  ;;  %v232_v17 = vld [vmem:[%s1099_s2 + $0x18] sm:$0xff] (!%p162_p10)  ;;  %vm365_vm0 = vcmask (!%p162_p10), 261120  }
   0xf   : > { %165 = sbr.rel (%p162_p10) target bundleno = 293 (0x125), region = 32  ;;  %422 = vmatprep.mubr.bf16.mxu0 (!%p162_p10), %v813_v0  ;;  %462 = vmatprep.mubr.bf16.mxu1 (!%p162_p10), %v813_v0  ;;  %v725_v15 = vld [vmem:[%s1097_s0] sm:$0xff] (!%p162_p10)   ;;  %v230_v18 = vld [vmem:[%s1099_s2 + $0x8] sm:$0xff] (!%p162_p10)  ;;  %v236_v23 = vld [vmem:[%s1099_s2 + $0x38] sm:$0xff] (!%p162_p10)  ;;  %s186_s28 = sand.u32 (!%p162_p10), 1, %s795_s13  }
  0x10   : > { %724 = vset.pattern.permute.xlu1 (!%p162_p10), %v813_v0  ;;  %723 = vset.pattern.permute.xlu0 (!%p162_p10), %v813_v0  ;;  %v726_v16 = vld [vmem:[%s1097_s0 + $0x20] sm:$0xff] (!%p162_p10)   ;;  %v234_v19 = vld [vmem:[%s1099_s2 + $0x28] sm:$0xff] (!%p162_p10)  ;;  %v235_v24 = vld [vmem:[%s1099_s2 + $0x30] sm:$0xff] (!%p162_p10)  ;;  %s635_s29 = sshll.u32 (!%p162_p10), %s186_s28, 8  ;;  %s660_s4 = sshll.u32 (!%p162_p10), %s803_s15, 12 }
  0x11   : > { %257 = vperm.xlu1 (!%p162_p10), %724, %v231_v13   ;;  %247 = vperm.xlu0 (!%p162_p10), %723, %v229_v14   ;;  %v233_v20 = vld [vmem:[%s1099_s2 + $0x20] sm:$0xff] (!%p162_p10)  ;;  %v727_v21 = vld [vmem:[%s1097_s0 + $0x8] sm:$0xff] (!%p162_p10)   ;;  %v729_v27 = vld [vmem:[%s1097_s0 + $0x10] sm:$0xff] (!%p162_p10)   ;;  %s1038_s7 = scalar_lea.hbm (!%p162_p10), %s1100_s3, %s660_s4  ;;  %s1051_s8 = scalar_lea.sflag (!%p162_p10), [#allocation3], %s186_s28 }
  0x12   : > { %v728_v22 = vld [vmem:[%s1097_s0 + $0x28] sm:$0xff] (!%p162_p10)   ;;  %v237_v26 = vld [vmem:[%s1099_s2 + $0x40] sm:$0xff] (!%p162_p10)  ;;  %v730_v28 = vld [vmem:[%s1097_s0 + $0x30] sm:$0xff] (!%p162_p10)   ;;  %s814_s10 = smov (!%p162_p10), [#allocation2]  }
  0x13   : > { %v238_v25 = vld [vmem:[%s1099_s2 + $0x48] sm:$0xff] (!%p162_p10)  ;;  %v240_v29 = vld [vmem:[%s1099_s2 + $0x58] sm:$0xff] (!%p162_p10)  ;;  %v239_v30 = vld [vmem:[%s1099_s2 + $0x50] sm:$0xff] (!%p162_p10)  ;;  %s737_s11 = sshll.u32 (!%p162_p10), %s814_s10, 4  ;;  %s738_s11 = int_to_ptr.vmem [resolvable:$false] %s737_s11 }
  0x14   : > { %v242_v31 = vld [vmem:[%s1099_s2 + $0x68] sm:$0xff] (!%p162_p10)  ;;  %v241_v32 = vld [vmem:[%s1099_s2 + $0x60] sm:$0xff] (!%p162_p10)  ;;  %v731_v33 = vld [vmem:[%s1097_s0 + $0x18] sm:$0xff] (!%p162_p10)   ;;  %s739_s18 = scalar_lea.vmem (!%p162_p10), %s738_s11, 8192 }
  0x15   : > { %262 = vperm.xlu1 (!%p162_p10), %724, %v232_v17   ;;  %252 = vperm.xlu0 (!%p162_p10), %723, %v230_v18   ;;  %v732_v34 = vld [vmem:[%s1097_s0 + $0x38] sm:$0xff] (!%p162_p10)   ;;  %v243_v36 = vld [vmem:[%s1099_s2 + $0x70] sm:$0xff] (!%p162_p10) }
  0x16   : > { %s191_s26 = scalar_select %p190_p11, %s803_s15, 1  ;;  %v244_v35 = vld [vmem:[%s1099_s2 + $0x78] sm:$0xff] }
  0x18   : > { %s659_s27 = sshll.u32 %s191_s26, 6 }
  0x19   : > { %s197_s30 = scalar_lea.vmem %s1098_s1, %s659_s27  ;;  %272 = vperm.xlu1 %724, %v234_v19   ;;  %267 = vperm.xlu0 %723, %v233_v20  }
  0x1a   : > { %v202_v1 = vld [vmem:[%s197_s30 + $0x8] sm:$0xff]  ;;  %v204_v2 = vld [vmem:[%s197_s30 + $0x18] sm:$0xff]  ;;  %v201_v3 = vld [vmem:[%s197_s30] sm:$0xff] }
  0x1b   : > { %v210_v4 = vpack.c.bf16 %v204_v2, %v202_v1  ;;  %v203_v5 = vld [vmem:[%s197_s30 + $0x10] sm:$0xff]  ;;  %v206_v6 = vld [vmem:[%s197_s30 + $0x28] sm:$0xff]  ;;  %v208_v7 = vld [vmem:[%s197_s30 + $0x38] sm:$0xff] }
  0x1c   : > { %v209_v8 = vpack.c.bf16 %v203_v5, %v201_v3  ;;  %v212_v9 = vpack.c.bf16 %v208_v7, %v206_v6  ;;  %v205_v10 = vld [vmem:[%s197_s30 + $0x20] sm:$0xff]  ;;  %v207_v11 = vld [vmem:[%s197_s30 + $0x30] sm:$0xff]  ;;  %s998_s30 = scalar_lea.vmem [#allocation2], %s635_s29 }
  0x1d   : > { %390 = vmatprep.subr.bf16.mxu0 %v210_v4  ;;  %661 = vmatprep.subr.bf16.mxu1 %v210_v4  ;;  %v211_v12 = vpack.c.bf16 %v207_v11, %v205_v10  ;;  %s551_s5 = sshll.u32 %s998_s30, 4  ;;  %s1040_s5 = int_to_ptr.vmem [resolvable:$true] %s551_s5 }
  0x1e   : > { %391 = vmatpush1.bf16.msra.mxu0 %v209_v8  ;;  %663 = vmatpush1.bf16.msra.mxu1 %v209_v8  ;;  %s733_s9 = scalar_lea.vmem %s1040_s5, 4096  ;;  %p740_p1 = scmp.lt.s32.totalorder %s1040_s5, %s738_s11 }
  0x1f   : > { %392 = vmatprep.subr.bf16.mxu0 %v212_v9  ;;  %662 = vmatprep.subr.bf16.mxu1 %v212_v9  ;;  %p734_p12 = scmp.ne.s32.totalorder %s1040_s5, %s733_s9  ;;  %p741_p2 = scmp.lt.s32.totalorder %s739_s18, %s733_s9 }
  0x20   : > { %282 = vperm.xlu1 %724, %v236_v23   ;;  %277 = vperm.xlu0 %723, %v235_v24  }
  0x21   : > { %p735_p13 = pnand %p734_p12, %p877_p4  ;;  %p742_p3 = por %p741_p2, %p740_p1 }
  0x22   : > { %393 = vmatpush1.bf16.msra.mxu0 %v211_v12  ;;  %664 = vmatpush1.bf16.msra.mxu1 %v211_v12 }
  0x23   : > { %p736_p0 = pneg %p735_p13 }
  0x24   : > { %292 = vperm.xlu1 %724, %v238_v25   ;;  %287 = vperm.xlu0 %723, %v237_v26  }
  0x25   : > { %646 = vmatmul.mubr.msk.bf16.vlgmr.msra.gmra.mrb[0].mxu0 %vm365_vm0, %v725_v15  ;;  %650 = vmatmul.mubr.msk.bf16.vlgmr.msra.gmra.mrb[0].mxu1 %vm365_vm0, %v726_v16  ;;  %p743_p5 = pnand %p742_p3, %p736_p0 }
  0x26   : > { %432 = vmatprep.mubr.bf16.mxu0 %v813_v0  ;;  %472 = vmatprep.mubr.bf16.mxu1 %v813_v0 }
  0x28   : > { %302 = vperm.xlu1 %724, %v240_v29   ;;  %297 = vperm.xlu0 %723, %v239_v30  }
  0x2c   : > { %312 = vperm.xlu1 %724, %v242_v31   ;;  %307 = vperm.xlu0 %723, %v241_v32  }
  0x2d   : > { %647 = vmatmul.mubr.msk.bf16.gmra.mrb[4].mxu0 %vm365_vm0, %v727_v21  ;;  %651 = vmatmul.mubr.msk.bf16.gmra.mrb[4].mxu1 %vm365_vm0, %v728_v22 }
  0x2e   : > { %442 = vmatprep.mubr.bf16.mxu0 %v813_v0  ;;  %482 = vmatprep.mubr.bf16.mxu1 %v813_v0 }
  0x30   : > { %322 = vperm.xlu1 %724, %v244_v35   ;;  %317 = vperm.xlu0 %723, %v243_v36  }
  0x35   : > { %648 = vmatmul.mubr.msk.bf16.gmra.mrb[8].mxu0 %vm365_vm0, %v729_v27  ;;  %652 = vmatmul.mubr.msk.bf16.gmra.mrb[8].mxu1 %vm365_vm0, %v730_v28 }
  0x36   : > { %452 = vmatprep.mubr.bf16.mxu0 %v813_v0  ;;  %492 = vmatprep.mubr.bf16.mxu1 %v813_v0 }
  0x3d   : > { %649 = vmatmul.mubr.msk.bf16.gmra.mrb[12].mxu0 %vm365_vm0, %v731_v33  ;;  %653 = vmatmul.mubr.msk.bf16.gmra.mrb[12].mxu1 %vm365_vm0, %v732_v34 }
  0x90   : > { %v258_v37 = vpop.permute.xlu1 %257  ;;  %v248_v38 = vpop.permute.xlu0 %247 }
  0x94   : > { %v263_v39 = vpop.permute.xlu1 %262  ;;  %v253_v40 = vpop.permute.xlu0 %252 }
  0x98   : > { %v987_v41 = vpop.permute.xlu1 %272  ;;  %v989_v42 = vpop.permute.xlu0 %267 }
  0x9f   : > { %v991_v43 = vpop.permute.xlu1 %282  ;;  %v993_v44 = vpop.permute.xlu0 %277 }
  0xa3   : > { %v293_v45 = vpop.permute.xlu1 %292  ;;  %v288_v46 = vpop.permute.xlu0 %287 }
  0xa7   : > { %v303_v63 = vpop.permute.xlu1 %302  ;;  %v298_v0 = vpop.permute.xlu0 %297 }
  0xab   : > { %v313_v17 = vpop.permute.xlu1 %312  ;;  %v308_v18 = vpop.permute.xlu0 %307 }
  0xaf   : > { %v323_v35 = vpop.permute.xlu1 %322  ;;  %v318_v36 = vpop.permute.xlu0 %317 }
  0xf8   : > { %v424_v47 = vpop.f32.mrb[0].mxu0  ;;  %v464_v48 = vpop.f32.mrb[0].mxu1 }
  0xf9   : > { %v425_v49 = vadd.f32 %v424_v47, %v248_v38  ;;  %v465_v50 = vadd.f32 %v464_v48, %v288_v46  ;;  %v426_v51 = vpop.f32.mrb[1].mxu0  ;;  %v466_v52 = vpop.f32.mrb[1].mxu1 }
  0xfa   : > { %v427_v53 = vadd.f32 %v426_v51, %v248_v38  ;;  %v467_v54 = vadd.f32 %v466_v52, %v288_v46  ;;  %v428_v55 = vpop.f32.mrb[2].mxu0  ;;  %v468_v56 = vpop.f32.mrb[2].mxu1 }
  0xfb   : > { %503 = vst [vmem:[%s998_s30] sm:$0xff] %v425_v49  ;;  %519 = vst [vmem:[%s998_s30 + $0x80] sm:$0xff] %v465_v50  ;;  %v429_v57 = vadd.f32 %v428_v55, %v253_v40  ;;  %v469_v58 = vadd.f32 %v468_v56, %v293_v45  ;;  %v430_v59 = vpop.f32.mrb[3].mxu0  ;;  %v470_v60 = vpop.f32.mrb[3].mxu1 }
  0xfc   : > { %504 = vst [vmem:[%s998_s30 + $0x8] sm:$0xff] %v427_v53  ;;  %520 = vst [vmem:[%s998_s30 + $0x88] sm:$0xff] %v467_v54  ;;  %v431_v61 = vadd.f32 %v430_v59, %v253_v40  ;;  %v471_v62 = vadd.f32 %v470_v60, %v293_v45 }
  0xfd   : > { %505 = vst [vmem:[%s998_s30 + $0x10] sm:$0xff] %v429_v57  ;;  %521 = vst [vmem:[%s998_s30 + $0x90] sm:$0xff] %v469_v58 }
  0xfe   : > { %506 = vst [vmem:[%s998_s30 + $0x18] sm:$0xff] %v431_v61  ;;  %522 = vst [vmem:[%s998_s30 + $0x98] sm:$0xff] %v471_v62 }
 0x100   : > { %v434_v1 = vpop.f32.mrb[4].mxu0  ;;  %v474_v2 = vpop.f32.mrb[4].mxu1 }
 0x101   : > { %v435_v3 = vadd.f32 %v434_v1, %v258_v37  ;;  %v475_v4 = vadd.f32 %v474_v2, %v298_v0  ;;  %v436_v5 = vpop.f32.mrb[5].mxu0  ;;  %v476_v6 = vpop.f32.mrb[5].mxu1 }
 0x102   : > { %v437_v7 = vadd.f32 %v436_v5, %v258_v37  ;;  %v477_v8 = vadd.f32 %v476_v6, %v298_v0  ;;  %v438_v9 = vpop.f32.mrb[6].mxu0  ;;  %v478_v10 = vpop.f32.mrb[6].mxu1 }
 0x103   : > { %507 = vst [vmem:[%s998_s30 + $0x20] sm:$0xff] %v435_v3  ;;  %523 = vst [vmem:[%s998_s30 + $0xa0] sm:$0xff] %v475_v4  ;;  %v439_v11 = vadd.f32 %v438_v9, %v263_v39  ;;  %v479_v12 = vadd.f32 %v478_v10, %v303_v63  ;;  %v440_v13 = vpop.f32.mrb[7].mxu0  ;;  %v480_v14 = vpop.f32.mrb[7].mxu1 }
 0x104   : > { %508 = vst [vmem:[%s998_s30 + $0x28] sm:$0xff] %v437_v7  ;;  %524 = vst [vmem:[%s998_s30 + $0xa8] sm:$0xff] %v477_v8  ;;  %v441_v15 = vadd.f32 %v440_v13, %v263_v39  ;;  %v481_v16 = vadd.f32 %v480_v14, %v303_v63 }
 0x105   : > { %509 = vst [vmem:[%s998_s30 + $0x30] sm:$0xff] %v439_v11  ;;  %525 = vst [vmem:[%s998_s30 + $0xb0] sm:$0xff] %v479_v12 }
 0x106   : > { %510 = vst [vmem:[%s998_s30 + $0x38] sm:$0xff] %v441_v15  ;;  %526 = vst [vmem:[%s998_s30 + $0xb8] sm:$0xff] %v481_v16 }
 0x108   : > { %v444_v19 = vpop.f32.mrb[8].mxu0  ;;  %v484_v20 = vpop.f32.mrb[8].mxu1 }
 0x109   : > { %v445_v21 = vadd.f32 %v444_v19, %v989_v42  ;;  %v485_v22 = vadd.f32 %v484_v20, %v308_v18  ;;  %v446_v23 = vpop.f32.mrb[9].mxu0  ;;  %v486_v24 = vpop.f32.mrb[9].mxu1 }
 0x10a   : > { %v447_v25 = vadd.f32 %v446_v23, %v989_v42  ;;  %v487_v26 = vadd.f32 %v486_v24, %v308_v18  ;;  %v448_v27 = vpop.f32.mrb[10].mxu0  ;;  %v488_v28 = vpop.f32.mrb[10].mxu1 }
 0x10b   : > { %511 = vst [vmem:[%s998_s30 + $0x40] sm:$0xff] %v445_v21  ;;  %527 = vst [vmem:[%s998_s30 + $0xc0] sm:$0xff] %v485_v22  ;;  %v449_v29 = vadd.f32 %v448_v27, %v987_v41  ;;  %v489_v30 = vadd.f32 %v488_v28, %v313_v17  ;;  %v450_v31 = vpop.f32.mrb[11].mxu0  ;;  %v490_v32 = vpop.f32.mrb[11].mxu1 }
 0x10c   : > { %512 = vst [vmem:[%s998_s30 + $0x48] sm:$0xff] %v447_v25  ;;  %528 = vst [vmem:[%s998_s30 + $0xc8] sm:$0xff] %v487_v26  ;;  %v451_v33 = vadd.f32 %v450_v31, %v987_v41  ;;  %v491_v34 = vadd.f32 %v490_v32, %v313_v17 }
 0x10d   : > { %513 = vst [vmem:[%s998_s30 + $0x50] sm:$0xff] %v449_v29  ;;  %529 = vst [vmem:[%s998_s30 + $0xd0] sm:$0xff] %v489_v30 }
 0x10e   : > { %514 = vst [vmem:[%s998_s30 + $0x58] sm:$0xff] %v451_v33  ;;  %530 = vst [vmem:[%s998_s30 + $0xd8] sm:$0xff] %v491_v34 }
 0x110   : > { %v454_v37 = vpop.f32.mrb[12].mxu0  ;;  %v494_v38 = vpop.f32.mrb[12].mxu1 }
 0x111   : > { %v455_v39 = vadd.f32 %v454_v37, %v993_v44  ;;  %v495_v40 = vadd.f32 %v494_v38, %v318_v36  ;;  %v456_v42 = vpop.f32.mrb[13].mxu0  ;;  %v496_v41 = vpop.f32.mrb[13].mxu1 }
 0x112   : > { %v457_v45 = vadd.f32 %v456_v42, %v993_v44  ;;  %v497_v46 = vadd.f32 %v496_v41, %v318_v36  ;;  %v458_v47 = vpop.f32.mrb[14].mxu0  ;;  %v498_v48 = vpop.f32.mrb[14].mxu1 }
 0x113   : > { %515 = vst [vmem:[%s998_s30 + $0x60] sm:$0xff] %v455_v39  ;;  %531 = vst [vmem:[%s998_s30 + $0xe0] sm:$0xff] %v495_v40  ;;  %v459_v49 = vadd.f32 %v458_v47, %v991_v43  ;;  %v499_v50 = vadd.f32 %v498_v48, %v323_v35  ;;  %v460_v51 = vpop.f32.mrb[15].mxu0  ;;  %v500_v52 = vpop.f32.mrb[15].mxu1 }
 0x114   : > { %516 = vst [vmem:[%s998_s30 + $0x68] sm:$0xff] %v457_v45  ;;  %532 = vst [vmem:[%s998_s30 + $0xe8] sm:$0xff] %v497_v46  ;;  %v461_v44 = vadd.f32 %v460_v51, %v991_v43  ;;  %v501_v53 = vadd.f32 %v500_v52, %v323_v35 }
 0x115   : > { %517 = vst [vmem:[%s998_s30 + $0x70] sm:$0xff] %v459_v49  ;;  %533 = vst [vmem:[%s998_s30 + $0xf0] sm:$0xff] %v499_v50 }
 0x116   : > { %518 = vst [vmem:[%s998_s30 + $0x78] sm:$0xff] %v461_v44  ;;  %534 = vst [vmem:[%s998_s30 + $0xf8] sm:$0xff] %v501_v53 }
 0x117   : > { %746 = shalt.err (!%p743_p5)
}
 0x118   : > { %s747_s19 = scalar_lea.hbm %s1038_s7, 4096  ;;  %s751_s26 = scalar_lea.hbm %s1100_s3, 8192 }
 0x119   : > { %p748_p6 = scmp.ne.s32.totalorder %s1038_s7, %s747_s19  ;;  %p752_p10 = scmp.lt.u32.totalorder %s1038_s7, %s1100_s3 }
 0x11a   : > { %p753_p11 = scmp.lt.u32.totalorder %s751_s26, %s747_s19  ;;  %p755_p13 = scmp.lt.u32.totalorder %s747_s19, %s1038_s7 }
 0x11b   : > { %p749_p7 = pnand %p748_p6, %p877_p4 }
 0x11c   : > { %p754_p12 = por %p753_p11, %p752_p10 }
 0x11d   : > { %p750_p9 = pneg %p749_p7 }
 0x11e   : > { %p756_p0 = por %p755_p13, %p754_p12 }
 0x120   : > { %p757_p1 = pnand %p756_p0, %p750_p9 }
 0x122   : > { %760 = shalt.err (!%p757_p1)
}
 0x123   : > { %s815_s29 = smov 256   ;;  %s816_s30 = smov 16  }
 0x124   : > { %665 = dma.vmem_to_hbm [thread:$0]  (%p877_p4), %s1040_s5, 4096, %s1038_s7, %s1051_s8, %s815_s29, %s815_s29, %s816_s30  }
 0x125 PF: > { %p671_p2 = scmp.ge.s32.totalorder %s811_s17, 2  ;;  %s566_s4 = sand.u32 1, %s791_s12  }
 0x126   : > { %s567_s15 = scalar_lea.sflag [#allocation3], %s566_s4 }
 0x127   : > { %p668_p3 = pnand %p671_p2, %p884_p8 }
 0x129   : > { %786 = dma.done.wait (!%p668_p3), %s567_s15, 4096  }
 0x12a   : > { %788 = vsyncadd (!%p668_p3), %s567_s15, 4294963200  ;;  %s16_s17 = sadd.s32 1, %s811_s17   ;;  %s1103_s12 = smov %s795_s13 }
 0x12b   : > { %p13_p5 = scmp.ge.s32.totalorder %s16_s17, 4   ;;  %s1104_s13 = smov %s799_s14 }
 0x12c   : > { %s1105_s14 = smov %s890_s25  ;;  %s1106_s15 = smov %s807_s16 }
 0x12d   : > { %s1107_s16 = smov %s1109_s20  ;;  %15 = sbr.rel (!%p13_p5) target bundleno = 4 (0x4), region = 67 }
 0x134   :  { %572 = vsyncpa [#allocation3], 1 }
 0x135   :  { %574 = vsyncpa [#allocation3 + $0x1], 1 }

</bundles_post_ra>
